<compile_context>
chip_gen: v5e
topology: v5e:2x2
jax: 0.10.0
libtpu: 0.0.40
codegen_flags: <defaults>
</compile_context>

<pallas_src>
import math
from functools import partial

import jax
import jax.numpy as jnp
from jax.experimental import pallas as pl
from jax.experimental.pallas import tpu as pltpu


def _round_up(x, m):
    return ((x + m - 1) // m) * m


def gcn_kernel(adj_ref, h_ref, ndst_ref, w_ref, b_ref, drop_ref, o_ref, acc_ref,
               *, tk, h_resident):
    # NOTE: program_id / num_programs are only evaluated at kernel top level
    # (never inside a pl.when body) so the interpret/CPU fallback can substitute them.
    k = pl.program_id(1)
    last_k = pl.num_programs(1) - 1

    @pl.when(k == 0)
    def _():
        acc_ref[...] = jnp.zeros_like(acc_ref)

    if h_resident:
        # H (pre-normed, bf16) is fully resident in VMEM; slice the k-th src block.
        h_blk = h_ref[pl.ds(k * tk, tk), :]
    else:
        h_blk = h_ref[...]

    # acc(i) += A[i, k] @ (norm_src[k] * H[k])   -- bf16 MXU, f32 accumulation
    acc_ref[...] += jnp.dot(adj_ref[...], h_blk, preferred_element_type=jnp.float32)

    # Epilogue once per dst tile: post-norm, project by W, bias, ReLU, dropout.
    @pl.when(k == last_k)
    def _():
        agg = acc_ref[...] * ndst_ref[...]                         # (tm, Fin_p), f32
        out = jnp.dot(agg.astype(jnp.bfloat16), w_ref[...],        # bf16 MXU, f32 acc
                      preferred_element_type=jnp.float32)          # (tm, Fout_p)
        out = out + b_ref[...]
        out = jnp.maximum(out, 0.0)                                # activation = ReLU
        out = out * drop_ref[...]                                  # pre-scaled keep mask
        o_ref[...] = out.astype(o_ref.dtype)


def gcn_layer_forward(h, weight, bias, norm, adj, drop_key, dropout_p,
                      *, tm=256, tk=1024):
    """h:(N,Fin) f32, weight:(Fin,Fout) f32, bias:(Fout,) f32, norm:(N,) f32,
    adj:(N,N) dense edge weights (adj[dst,src]), drop_key: jax PRNG key."""
    N, fin = h.shape
    fout = weight.shape[1]

    fin_p = _round_up(max(fin, 1), 128)
    fout_p = _round_up(max(fout, 1), 128)

    # Clamp tiles to the (128-aligned) problem size, then pad rows/cols independently
    # (no lcm blow-up on the quadratic adjacency).
    n128 = _round_up(N, 128)
    tm_eff = min(tm, n128)
    tk_eff = min(tk, n128)
    n_rows = _round_up(N, tm_eff)   # dst axis
    n_cols = _round_up(N, tk_eff)   # src / reduction axis

    # Adjacency stream in bf16 (dominant N^2 bytes).
    adj_p = jnp.pad(adj, ((0, n_rows - N), (0, n_cols - N))).astype(jnp.bfloat16)

    # Pre-normalize source features in the wrapper (O(N*Fin)) and cast to bf16.
    h_src = (h * norm[:, None]).astype(jnp.bfloat16)
    h_p = jnp.pad(h_src, ((0, n_cols - N), (0, fin_p - fin)))

    w_p = jnp.pad(weight, ((0, fin_p - fin), (0, fout_p - fout))).astype(jnp.bfloat16)
    b_p = jnp.pad(bias.reshape(1, -1), ((0, 0), (0, fout_p - fout))).astype(jnp.float32)
    ndst_p = jnp.pad(norm.reshape(-1, 1), ((0, n_rows - N), (0, 0))).astype(jnp.float32)

    # Dropout keep-mask, pre-scaled by 1/(1-p), generated deterministically from the key.
    p = float(dropout_p)
    if p <= 0.0:
        drop = jnp.ones((N, fout), jnp.float32)
    elif p >= 1.0:                          # degenerate: everything dropped
        drop = jnp.zeros((N, fout), jnp.float32)
    else:
        keep = jax.random.bernoulli(drop_key, 1.0 - p, (N, fout))
        drop = keep.astype(jnp.float32) * (1.0 / (1.0 - p))
    drop_p_arr = jnp.pad(drop, ((0, n_rows - N), (0, fout_p - fout)))

    # Make the bf16 H fully VMEM-resident when small (DMA'd once instead of per dst tile).
    h_resident = (n_cols * fin_p * 2) <= (6 * 1024 * 1024)
    if h_resident:
        h_spec = pl.BlockSpec((n_cols, fin_p), lambda i, k: (0, 0))
        h_block_rows = n_cols
    else:
        h_spec = pl.BlockSpec((tk_eff, fin_p), lambda i, k: (k, 0))
        h_block_rows = tk_eff

    grid = (n_rows // tm_eff, n_cols // tk_eff)
    kernel = partial(gcn_kernel, tk=tk_eff, h_resident=h_resident)

    # Explicit VMEM budget (double-buffered streamed inputs + resident params + acc),
    # capped at 48 MiB so it also fits v7x's 64 MiB physical VMEM with headroom.
    vmem_bytes = (
        2 * tm_eff * tk_eff * 2            # adj tiles (bf16)
        + 2 * h_block_rows * fin_p * 2     # h (bf16, resident or streamed)
        + 2 * tm_eff * 4                   # norm_dst
        + 2 * fin_p * fout_p * 2           # weight (bf16)
        + 2 * fout_p * 4                   # bias
        + 2 * tm_eff * fout_p * 4          # dropout mask tiles
        + 2 * tm_eff * fout_p * 4          # output tiles
        + tm_eff * fin_p * 4               # accumulator scratch
    )
    vmem_limit = int(min(max(2 * vmem_bytes, 16 * 1024 * 1024), 48 * 1024 * 1024))

    grid_spec = pltpu.PrefetchScalarGridSpec(
        num_scalar_prefetch=0,
        grid=grid,
        in_specs=[
            pl.BlockSpec((tm_eff, tk_eff), lambda i, k: (i, k)),    # adj
            h_spec,                                                  # pre-normed H (bf16)
            pl.BlockSpec((tm_eff, 1), lambda i, k: (i, 0)),          # norm (dst)
            pl.BlockSpec((fin_p, fout_p), lambda i, k: (0, 0)),      # weight (bf16)
            pl.BlockSpec((1, fout_p), lambda i, k: (0, 0)),          # bias
            pl.BlockSpec((tm_eff, fout_p), lambda i, k: (i, 0)),     # dropout mask
        ],
        out_specs=pl.BlockSpec((tm_eff, fout_p), lambda i, k: (i, 0)),
        scratch_shapes=[pltpu.VMEM((tm_eff, fin_p), jnp.float32)],
    )

    out_p = pl.pallas_call(
        kernel,
        out_shape=jax.ShapeDtypeStruct((n_rows, fout_p), jnp.float32),
        grid_spec=grid_spec,
        compiler_params=pltpu.CompilerParams(
            dimension_semantics=("parallel", "arbitrary"),
            vmem_limit_bytes=vmem_limit,
        ),
    )(adj_p, h_p, ndst_p, w_p, b_p, drop_p_arr)

    return out_p[:N, :fout]


if __name__ == "__main__":
    # Small shapes, but large enough to exercise padding + the resident-H path.
    N_NODES = 200
    IN_FEATS = 8
    OUT_FEATS = 32
    DROPOUT_P = 0.5

    key = jax.random.PRNGKey(0)
    k_w, k_b, k_h, k_adj, k_mask, k_drop = jax.random.split(key, 6)

    # deterministic parameter init mirroring reset_parameters():
    # uniform(-stdv, stdv) with stdv = 1/sqrt(out_feats)
    stdv = 1.0 / math.sqrt(OUT_FEATS)
    weight = jax.random.uniform(k_w, (IN_FEATS, OUT_FEATS), jnp.float32, -stdv, stdv)
    bias = jax.random.uniform(k_b, (OUT_FEATS,), jnp.float32, -stdv, stdv)

    # node features
    h = jax.random.normal(k_h, (N_NODES, IN_FEATS), jnp.float32)

    # dense weighted adjacency (adj[dst, src] = edge weight), with self loops
    mask = (jax.random.uniform(k_mask, (N_NODES, N_NODES)) < 0.3).astype(jnp.float32)
    mask = jnp.maximum(mask, jnp.eye(N_NODES, dtype=jnp.float32))
    edge_w = jax.random.uniform(k_adj, (N_NODES, N_NODES), jnp.float32, 0.1, 1.0)
    adj = mask * edge_w

    # symmetric-norm style node normalizer: deg^{-1/2}
    deg = jnp.maximum(jnp.sum(mask, axis=1), 1.0)
    norm = (deg ** -0.5).astype(jnp.float32)

    # sanity check (dropout disabled) against a pure-JAX reference that mimics the
    # kernel's bf16 rounding of the MXU operands
    adj_q = adj.astype(jnp.bfloat16).astype(jnp.float32)
    hs_q = (h * norm[:, None]).astype(jnp.bfloat16).astype(jnp.float32)
    agg = (adj_q @ hs_q) * norm[:, None]
    w_q = weight.astype(jnp.bfloat16).astype(jnp.float32)
    ref = jnp.maximum(agg.astype(jnp.bfloat16).astype(jnp.float32) @ w_q
                      + bias[None, :], 0.0)

    out_nodrop = gcn_layer_forward(h, weight, bias, norm, adj, k_drop, 0.0)
    jax.block_until_ready(out_nodrop)
    assert out_nodrop.shape == (N_NODES, OUT_FEATS)
    assert jnp.allclose(out_nodrop, ref, atol=1e-2, rtol=1e-2), "mismatch vs reference"

    # full forward with training-mode dropout
    out = gcn_layer_forward(h, weight, bias, norm, adj, k_drop, DROPOUT_P)
    jax.block_until_ready(out)
    assert out.shape == (N_NODES, OUT_FEATS)
    assert bool(jnp.all(jnp.isfinite(out)))

    print("KERNEL_OK")
</pallas_src>

<mosaic_0001>
module attributes {stable_mosaic.version = 11 : i64} {
  func.func @gcn_kernel(%arg0: i32, %arg1: i32, %arg2: memref<256x256xbf16, #tpu.memory_space<vmem>>, %arg3: memref<256x128xbf16, #tpu.memory_space<vmem>>, %arg4: memref<256x1xf32, #tpu.memory_space<vmem>>, %arg5: memref<128x128xbf16, #tpu.memory_space<vmem>>, %arg6: memref<1x128xf32, #tpu.memory_space<vmem>>, %arg7: memref<256x128xf32, #tpu.memory_space<vmem>>, %arg8: memref<256x128xf32, #tpu.memory_space<vmem>>, %arg9: memref<256x128xf32, #tpu.memory_space<vmem>>) attributes {dimension_semantics = [#tpu.dimension_semantics<parallel>, #tpu.dimension_semantics<arbitrary>], iteration_bounds = array<i64: 1, 1>, scalar_prefetch = 0 : i64, scratch_operands = 1 : i64, tpu.core_type = #tpu.core_type<tc>, window_params = [{transform_indices = @transform_0, window_bounds = array<i64: 256, 256>}, {pipeline_mode = #tpu.pipeline_mode<synchronous>, transform_indices = @transform_1, window_bounds = array<i64: 256, 128>}, {transform_indices = @transform_2, window_bounds = array<i64: 256, 1>}, {pipeline_mode = #tpu.pipeline_mode<synchronous>, transform_indices = @transform_3, window_bounds = array<i64: 128, 128>}, {pipeline_mode = #tpu.pipeline_mode<synchronous>, transform_indices = @transform_4, window_bounds = array<i64: 1, 128>}, {transform_indices = @transform_5, window_bounds = array<i64: 256, 128>}, {transform_indices = @transform_6, window_bounds = array<i64: 256, 128>}]} {
    %c0_i32 = arith.constant 0 : i32
    %0 = arith.cmpi eq, %arg1, %c0_i32 : i32
    %1 = arith.extui %0 : i1 to i32
    %c0_i32_0 = arith.constant 0 : i32
    %2 = arith.cmpi ne, %1, %c0_i32_0 : i32
    scf.if %2 {
      %cst_9 = arith.constant 0.000000e+00 : f32
      %14 = vector.broadcast %cst_9 : f32 to vector<256x128xf32>
      %c0_10 = arith.constant 0 : index
      %c0_11 = arith.constant 0 : index
      %15 = vector.load %arg9[%c0_10, %c0_11] : memref<256x128xf32, #tpu.memory_space<vmem>>, vector<256x128xf32>
      tpu.vector_store %arg9[%c0_10, %c0_11], %14 {strides = array<i32>} : memref<256x128xf32, #tpu.memory_space<vmem>>, vector<256x128xf32>,
    } else {
    }
    %c256_i32 = arith.constant 256 : i32
    %3 = arith.muli %arg1, %c256_i32 : i32
    %4 = arith.index_cast %3 : i32 to index
    %c0 = arith.constant 0 : index
    %5 = vector.load %arg3[%4, %c0] : memref<256x128xbf16, #tpu.memory_space<vmem>>, vector<256x128xbf16>
    %c0_1 = arith.constant 0 : index
    %c0_2 = arith.constant 0 : index
    %6 = vector.load %arg9[%c0_1, %c0_2] : memref<256x128xf32, #tpu.memory_space<vmem>>, vector<256x128xf32>
    %c0_3 = arith.constant 0 : index
    %c0_4 = arith.constant 0 : index
    %7 = vector.load %arg2[%c0_3, %c0_4] : memref<256x256xbf16, #tpu.memory_space<vmem>>, vector<256x256xbf16>
    %cst = arith.constant dense<0.000000e+00> : vector<256x128xf32>
    %8 = tpu.matmul %7, %5, %cst {dimension_numbers = #tpu.dot_dimension_numbers<[1], [0], [0], [1], [0, 0, 1, 1], [], []>} : vector<256x256xbf16>, vector<256x128xbf16>, vector<256x128xf32> -> vector<256x128xf32>
    %9 = arith.addf %6, %8 : vector<256x128xf32>
    %c0_5 = arith.constant 0 : index
    %c0_6 = arith.constant 0 : index
    %10 = vector.load %arg9[%c0_5, %c0_6] : memref<256x128xf32, #tpu.memory_space<vmem>>, vector<256x128xf32>
    tpu.vector_store %arg9[%c0_5, %c0_6], %9 {strides = array<i32>} : memref<256x128xf32, #tpu.memory_space<vmem>>, vector<256x128xf32>,
    %c0_i32_7 = arith.constant 0 : i32
    %11 = arith.cmpi eq, %arg1, %c0_i32_7 : i32
    %12 = arith.extui %11 : i1 to i32
    %c0_i32_8 = arith.constant 0 : i32
    %13 = arith.cmpi ne, %12, %c0_i32_8 : i32
    scf.if %13 {
      %c0_9 = arith.constant 0 : index
      %c0_10 = arith.constant 0 : index
      %14 = vector.load %arg9[%c0_9, %c0_10] : memref<256x128xf32, #tpu.memory_space<vmem>>, vector<256x128xf32>
      %c0_11 = arith.constant 0 : index
      %c0_12 = arith.constant 0 : index
      %15 = vector.load %arg4[%c0_11, %c0_12] : memref<256x1xf32, #tpu.memory_space<vmem>>, vector<256x1xf32>
      %16 = vector.broadcast %15 : vector<256x1xf32> to vector<256x128xf32>
      %17 = arith.mulf %14, %16 : vector<256x128xf32>
      %18 = arith.truncf %17 : vector<256x128xf32> to vector<256x128xbf16>
      %c0_13 = arith.constant 0 : index
      %c0_14 = arith.constant 0 : index
      %19 = vector.load %arg5[%c0_13, %c0_14] : memref<128x128xbf16, #tpu.memory_space<vmem>>, vector<128x128xbf16>
      %cst_15 = arith.constant dense<0.000000e+00> : vector<256x128xf32>
      %20 = tpu.matmul %18, %19, %cst_15 {dimension_numbers = #tpu.dot_dimension_numbers<[1], [0], [0], [1], [0, 0, 1, 1], [], []>} : vector<256x128xbf16>, vector<128x128xbf16>, vector<256x128xf32> -> vector<256x128xf32>
      %c0_16 = arith.constant 0 : index
      %c0_17 = arith.constant 0 : index
      %21 = vector.load %arg6[%c0_16, %c0_17] : memref<1x128xf32, #tpu.memory_space<vmem>>, vector<1x128xf32>
      %22 = vector.broadcast %21 : vector<1x128xf32> to vector<256x128xf32>
      %23 = arith.addf %20, %22 : vector<256x128xf32>
      %cst_18 = arith.constant 0.000000e+00 : f32
      %24 = vector.broadcast %cst_18 : f32 to vector<256x128xf32>
      %25 = arith.maximumf %23, %24 : vector<256x128xf32>
      %c0_19 = arith.constant 0 : index
      %c0_20 = arith.constant 0 : index
      %26 = vector.load %arg7[%c0_19, %c0_20] : memref<256x128xf32, #tpu.memory_space<vmem>>, vector<256x128xf32>
      %27 = arith.mulf %25, %26 : vector<256x128xf32>
      %c0_21 = arith.constant 0 : index
      %c0_22 = arith.constant 0 : index
      %28 = vector.load %arg8[%c0_21, %c0_22] : memref<256x128xf32, #tpu.memory_space<vmem>>, vector<256x128xf32>
      tpu.vector_store %arg8[%c0_21, %c0_22], %27 {strides = array<i32>} : memref<256x128xf32, #tpu.memory_space<vmem>>, vector<256x128xf32>,
    } else {
    }
    return
  }
  func.func @transform_0(%arg0: i32, %arg1: i32) -> (i32, i32) {
    %c0_i32 = arith.constant 0 : i32
    return %arg0, %arg1 : i32, i32
  }
  func.func @transform_1(%arg0: i32, %arg1: i32) -> (i32, i32) {
    %c0_i32 = arith.constant 0 : i32
    %c0_i32_0 = arith.constant 0 : i32
    %c0_i32_1 = arith.constant 0 : i32
    return %c0_i32, %c0_i32_0 : i32, i32
  }
  func.func @transform_2(%arg0: i32, %arg1: i32) -> (i32, i32) {
    %c0_i32 = arith.constant 0 : i32
    %c0_i32_0 = arith.constant 0 : i32
    return %arg0, %c0_i32 : i32, i32
  }
  func.func @transform_3(%arg0: i32, %arg1: i32) -> (i32, i32) {
    %c0_i32 = arith.constant 0 : i32
    %c0_i32_0 = arith.constant 0 : i32
    %c0_i32_1 = arith.constant 0 : i32
    return %c0_i32, %c0_i32_0 : i32, i32
  }
  func.func @transform_4(%arg0: i32, %arg1: i32) -> (i32, i32) {
    %c0_i32 = arith.constant 0 : i32
    %c0_i32_0 = arith.constant 0 : i32
    %c0_i32_1 = arith.constant 0 : i32
    return %c0_i32, %c0_i32_0 : i32, i32
  }
  func.func @transform_5(%arg0: i32, %arg1: i32) -> (i32, i32) {
    %c0_i32 = arith.constant 0 : i32
    %c0_i32_0 = arith.constant 0 : i32
    return %arg0, %c0_i32 : i32, i32
  }
  func.func @transform_6(%arg0: i32, %arg1: i32) -> (i32, i32) {
    %c0_i32 = arith.constant 0 : i32
    %c0_i32_0 = arith.constant 0 : i32
    return %arg0, %c0_i32 : i32, i32
  }
}

</mosaic_0001>

<bundles_post_ra>
// kernel: tpu_custom_call.1
= control target key start
LH: loop header
LB: loop body
LE: loop exit
PB: predicated region body
PF: predicated region fallthrough
CT: control target
= control target key end

     0   :  { %11 = vsyncpa [#allocation4], 0  ;;  %s2176_s0 = inlined_call_operand.vmem [shape: bf16[256,256], index: 0, kind: input, shape index: {}]   ;;  %s2177_s1 = inlined_call_operand.hbm [shape: bf16[256,128], index: 1, kind: input, shape index: {}]   ;;  %s2178_s2 = inlined_call_operand.vmem [shape: f32[256,1], index: 2, kind: input, shape index: {}]   ;;  %s2179_s3 = inlined_call_operand.hbm [shape: bf16[128,128], index: 3, kind: input, shape index: {}]   ;;  %s2180_s4 = inlined_call_operand.vmem [shape: f32[1,128], index: 4, kind: input, shape index: {}]   ;;  %s2181_s5 = inlined_call_operand.hbm [shape: f32[256,128], index: 5, kind: input, shape index: {}]   ;;  %s2182_s6 = inlined_call_operand.hbm [shape: f32[256,128], index: 6, kind: output, shape index: {}]  }
   0x1   :  { %12 = vsyncpa [#allocation7], 0 }
   0x2   :  { %13 = vsyncpa [#allocation5], 0  ;;  %s35_s23 = sshll.u32 %s2179_s3, 4  ;;  %s1707_s24 = smov [#allocation6]   ;;  %s36_s23 = int_to_ptr.hbm [resolvable:$true] %s35_s23 }
   0x3   :  { %s37_s25 = sshll.u32 %s1707_s24, 4  ;;  %s20_s28 = sshll.u32 %s2177_s1, 4  ;;  %s38_s25 = int_to_ptr.vmem [resolvable:$true] %s37_s25  ;;  %s21_s28 = int_to_ptr.hbm [resolvable:$true] %s20_s28 }
   0x4   :  { %s1708_s29 = smov 64   ;;  %s1709_s30 = smov 4  }
   0x5   :  { %43 = dma.hbm_to_vmem [thread:$0]  %s36_s23, 1024, %s38_s25, [#allocation7], %s1708_s29, %s1708_s29, %s1709_s30  }
   0x6   :  { %s1710_s7 = smov [#allocation3]   ;;  %s50_s11 = sshll.u32 %s2181_s5, 4  ;;  %s51_s11 = int_to_ptr.hbm [resolvable:$true] %s50_s11 }
   0x7   :  { %s22_s8 = sshll.u32 %s1710_s7, 4  ;;  %s1711_s3 = smov [#allocation8]   ;;  %s23_s8 = int_to_ptr.vmem [resolvable:$true] %s22_s8 }
   0x8   :  { %28 = dma.hbm_to_vmem [thread:$0]  %s21_s28, 2048, %s23_s8, [#allocation4], %s1708_s29, %s1708_s29, %s1709_s30  }
   0x9   :  { %s52_s12 = sshll.u32 %s1711_s3, 4  ;;  %s1712_s13 = smov 128   ;;  %s53_s12 = int_to_ptr.vmem [resolvable:$true] %s52_s12 }
   0xa   :  { %s1713_s14 = smov 8  }
   0xb   :  { %58 = dma.hbm_to_vmem [thread:$0]  %s51_s11, 4096, %s53_s12, [#allocation7], %s1712_s13, %s1712_s13, %s1713_s14  }
   0xc   :  { %1701 = dma.done.wait [#allocation4], 2048  }
   0xd   :  { %1702 = vsyncadd [#allocation4], 4294965248 }
   0xe   :  { %1703 = dma.done.wait [#allocation7], 5120  }
   0xf   :  { %1704 = vsyncadd [#allocation7], 4294962176  ;;  %v1714_v0 = vmov 0   ;;  %v743_v1 = vld [vmem:[%s2178_s2 + $0x10] sm:$0xff]  ;;  %v741_v2 = vld [vmem:[%s2178_s2] sm:$0xff] }
  0x10   :  { %1602 = vset.pattern.permute.xlu1 %v1714_v0  ;;  %1601 = vset.pattern.permute.xlu0 %v1714_v0  ;;  %v1519_v3 = vld [vmem:[#allocation3 + $0x38] sm:$0xff]  ;;  %v1518_v5 = vld [vmem:[#allocation3 + $0x30] sm:$0xff]  ;;  %v742_v8 = vld [vmem:[%s2178_s2 + $0x8] sm:$0xff] }
  0x11   :  { %1603 = vset.pattern.permute.xlu2 %v1714_v0  ;;  %785 = vperm.xlu1 %1602, %v743_v1   ;;  %v1769_v4 = vld [vmem:[#allocation3 + $0x78] sm:$0xff]  ;;  %v1772_v6 = vld [vmem:[#allocation3 + $0x70] sm:$0xff]  ;;  %v1517_v9 = vld [vmem:[#allocation3 + $0x28] sm:$0xff] }
  0x12   :  { %775 = vperm.xlu0 %1601, %v741_v2   ;;  %464 = vmatpush.bf16.msra.mxu0 %v1519_v3  ;;  %v744_v7 = vld [vmem:[%s2178_s2 + $0x18] sm:$0xff]  ;;  %v1781_v10 = vld [vmem:[#allocation3 + $0x68] sm:$0xff]  ;;  %v745_v11 = vld [vmem:[%s2178_s2 + $0x20] sm:$0xff] }
  0x13   :  { %1568 = vmatpush.bf16.msra.mxu3 %v1519_v3  ;;  %553 = vmatpush.bf16.msra.mxu1 %v1769_v4  ;;  %v1516_v12 = vld [vmem:[#allocation3 + $0x20] sm:$0xff]  ;;  %v746_v14 = vld [vmem:[%s2178_s2 + $0x28] sm:$0xff]  ;;  %v748_v15 = vld [vmem:[%s2178_s2 + $0x38] sm:$0xff] }
  0x14   :  { %795 = vperm.xlu2 %1603, %v745_v11   ;;  %v1787_v13 = vld [vmem:[#allocation3 + $0x60] sm:$0xff]  ;;  %v747_v16 = vld [vmem:[%s2178_s2 + $0x30] sm:$0xff]  ;;  %v1515_v17 = vld [vmem:[#allocation3 + $0x18] sm:$0xff] }
  0x15   :  { %v1799_v18 = vld [vmem:[#allocation3 + $0x58] sm:$0xff]  ;;  %v1514_v19 = vld [vmem:[#allocation3 + $0x10] sm:$0xff]  ;;  %v749_v21 = vld [vmem:[%s2178_s2 + $0x40] sm:$0xff] }
  0x16   :  { %465 = vmatpush.bf16.msra.mxu0 %v1518_v5  ;;  %v1802_v20 = vld [vmem:[#allocation3 + $0x50] sm:$0xff]  ;;  %v750_v23 = vld [vmem:[%s2178_s2 + $0x48] sm:$0xff]  ;;  %v1512_v26 = vld [vmem:[#allocation3] sm:$0xff] }
  0x17   :  { %1569 = vmatpush.bf16.msra.mxu3 %v1518_v5  ;;  %554 = vmatpush.bf16.msra.mxu1 %v1772_v6  ;;  %v751_v22 = vld [vmem:[%s2178_s2 + $0x50] sm:$0xff]  ;;  %v1513_v24 = vld [vmem:[#allocation3 + $0x8] sm:$0xff]  ;;  %v1814_v27 = vld [vmem:[#allocation3 + $0x40] sm:$0xff] }
  0x18   :  { %v1521_v25 = vld [vmem:[#allocation3 + $0x48] sm:$0xff]  ;;  %v1290_v28 = vld [vmem:[%s2176_s0] sm:$0xf]  ;;  %v1528_v32 = vld [vmem:[%s2176_s0 + $0x4] sm:$0xf] }
  0x19   :  { %790 = vperm.xlu1 %1602, %v744_v7   ;;  %v1529_v29 = vld [vmem:[%s2176_s0 + $0x4] sm:$0xf0]  ;;  %v1386_v30 = vld [vmem:[%s2176_s0 + $0xc0] sm:$0xf]  ;;  %v1292_v33 = vld [vmem:[%s2176_s0 + $0x8] sm:$0xf0] }
  0x1a   :  { %780 = vperm.xlu0 %1601, %v742_v8   ;;  %466 = vmatpush.bf16.msra.mxu0 %v1517_v9  ;;  %v1553_v31 = vld [vmem:[%s2176_s0 + $0xc4] sm:$0xf0]  ;;  %v752_v34 = vld [vmem:[%s2178_s2 + $0x58] sm:$0xff]  ;;  %v753_v36 = vld [vmem:[%s2178_s2 + $0x60] sm:$0xff]  ;;  %v1291_v37 = vor.u32 %v1529_v29, %v1290_v28  ;;  %v1295_v39 = vor.u32 %v1528_v32, %v1292_v33 }
  0x1b   :  { %1570 = vmatpush.bf16.msra.mxu3 %v1517_v9  ;;  %555 = vmatpush.bf16.msra.mxu1 %v1781_v10  ;;  %v754_v35 = vld [vmem:[%s2178_s2 + $0x68] sm:$0xff]  ;;  %v1387_v38 = vor.u32 %v1553_v31, %v1386_v30  ;;  %v755_v40 = vld [vmem:[%s2178_s2 + $0x70] sm:$0xff]  ;;  %v757_v41 = vld [vmem:[%s2178_s2 + $0x80] sm:$0xff] }
  0x1c   :  { %800 = vperm.xlu2 %1603, %v746_v14   ;;  %v756_v42 = vld [vmem:[%s2178_s2 + $0x78] sm:$0xff]  ;;  %v1298_v43 = vld [vmem:[%s2176_s0 + $0x10] sm:$0xf]  ;;  %v1530_v47 = vld [vmem:[%s2176_s0 + $0x14] sm:$0xf] }
  0x1d   :  { %v1531_v44 = vld [vmem:[%s2176_s0 + $0x14] sm:$0xf0]  ;;  %v1394_v45 = vld [vmem:[%s2176_s0 + $0xd0] sm:$0xf]  ;;  %v1300_v48 = vld [vmem:[%s2176_s0 + $0x18] sm:$0xf0] }
  0x1e   :  { %467 = vmatpush.bf16.msra.mxu0 %v1516_v12  ;;  %v1555_v46 = vld [vmem:[%s2176_s0 + $0xd4] sm:$0xf0]  ;;  %v758_v49 = vld [vmem:[%s2178_s2 + $0x88] sm:$0xff]  ;;  %v765_v51 = vld [vmem:[%s2178_s2 + $0xc0] sm:$0xff]  ;;  %v1299_v52 = vor.u32 %v1531_v44, %v1298_v43  ;;  %v1303_v54 = vor.u32 %v1530_v47, %v1300_v48 }
  0x1f   :  { %1571 = vmatpush.bf16.msra.mxu3 %v1516_v12  ;;  %556 = vmatpush.bf16.msra.mxu1 %v1787_v13  ;;  %v766_v50 = vld [vmem:[%s2178_s2 + $0xc8] sm:$0xff]  ;;  %v1395_v53 = vor.u32 %v1555_v46, %v1394_v45  ;;  %v759_v55 = vld [vmem:[%s2178_s2 + $0x90] sm:$0xff]  ;;  %v760_v57 = vld [vmem:[%s2178_s2 + $0x98] sm:$0xff] }
  0x20   :  { %v767_v56 = vld [vmem:[%s2178_s2 + $0xd0] sm:$0xff]  ;;  %v1306_v58 = vld [vmem:[%s2176_s0 + $0x20] sm:$0xf]  ;;  %v1533_v59 = vld [vmem:[%s2176_s0 + $0x24] sm:$0xf0] }
  0x21   :  { %810 = vperm.xlu1 %1602, %v748_v15   ;;  %v1402_v60 = vld [vmem:[%s2176_s0 + $0xe0] sm:$0xf]  ;;  %v1557_v61 = vld [vmem:[%s2176_s0 + $0xe4] sm:$0xf0]  ;;  %v1532_v62 = vld [vmem:[%s2176_s0 + $0x24] sm:$0xf]  ;;  %v1307_v3 = vor.u32 %v1533_v59, %v1306_v58 }
  0x22   :  { %805 = vperm.xlu0 %1601, %v747_v16   ;;  %468 = vmatpush.bf16.msra.mxu0 %v1515_v17  ;;  %v1308_v63 = vld [vmem:[%s2176_s0 + $0x28] sm:$0xf0]  ;;  %v768_v0 = vld [vmem:[%s2178_s2 + $0xd8] sm:$0xff]  ;;  %v761_v2 = vld [vmem:[%s2178_s2 + $0xa0] sm:$0xff] }
  0x23   :  { %1572 = vmatpush.bf16.msra.mxu3 %v1515_v17  ;;  %557 = vmatpush.bf16.msra.mxu1 %v1799_v18  ;;  %v762_v1 = vld [vmem:[%s2178_s2 + $0xa8] sm:$0xff]  ;;  %v1311_v5 = vor.u32 %v1532_v62, %v1308_v63  ;;  %v763_v7 = vld [vmem:[%s2178_s2 + $0xb0] sm:$0xff]  ;;  %v1559_v12 = vld [vmem:[%s2176_s0 + $0xf4] sm:$0xf0] }
  0x24   :  { %815 = vperm.xlu2 %1603, %v749_v21   ;;  %v770_v8 = vld [vmem:[%s2178_s2 + $0xe8] sm:$0xff]  ;;  %v1314_v9 = vld [vmem:[%s2176_s0 + $0x30] sm:$0xf]  ;;  %v1316_v14 = vld [vmem:[%s2176_s0 + $0x38] sm:$0xf0] }
  0x25   :  { %v1410_v11 = vld [vmem:[%s2176_s0 + $0xf0] sm:$0xf]  ;;  %v764_v15 = vld [vmem:[%s2178_s2 + $0xb8] sm:$0xff]  ;;  %v1322_v21 = vld [vmem:[%s2176_s0 + $0x40] sm:$0xf] }
  0x26   :  { %469 = vmatpush.bf16.msra.mxu0 %v1514_v19  ;;  %v772_v16 = vld [vmem:[%s2178_s2 + $0xf8] sm:$0xff]  ;;  %v771_v17 = vld [vmem:[%s2178_s2 + $0xf0] sm:$0xff]  ;;  %v1338_v43 = vld [vmem:[%s2176_s0 + $0x60] sm:$0xf] }
  0x27   :  { %1573 = vmatpush.bf16.msra.mxu3 %v1514_v19  ;;  %558 = vmatpush.bf16.msra.mxu1 %v1802_v20  ;;  %v1411_v19 = vor.u32 %v1559_v12, %v1410_v11  ;;  %v1330_v30 = vld [vmem:[%s2176_s0 + $0x50] sm:$0xf]  ;;  %v1539_v31 = vld [vmem:[%s2176_s0 + $0x54] sm:$0xf0]  ;;  %v1554_v32 = vld [vmem:[%s2176_s0 + $0xd4] sm:$0xf] }
  0x28   :  { %v1396_v33 = vld [vmem:[%s2176_s0 + $0xd8] sm:$0xf0]  ;;  %v1541_v44 = vld [vmem:[%s2176_s0 + $0x64] sm:$0xf0]  ;;  %v1556_v45 = vld [vmem:[%s2176_s0 + $0xe4] sm:$0xf] }
  0x29   :  { %825 = vperm.xlu1 %1602, %v751_v22   ;;  %v1537_v22 = vld [vmem:[%s2176_s0 + $0x44] sm:$0xf0]  ;;  %v1404_v46 = vld [vmem:[%s2176_s0 + $0xe8] sm:$0xf0]  ;;  %v1540_v47 = vld [vmem:[%s2176_s0 + $0x64] sm:$0xf] }
  0x2a   :  { %820 = vperm.xlu0 %1601, %v750_v23   ;;  %470 = vmatpush.bf16.msra.mxu0 %v1513_v24  ;;  %v1552_v23 = vld [vmem:[%s2176_s0 + $0xc4] sm:$0xf]  ;;  %v1340_v48 = vld [vmem:[%s2176_s0 + $0x68] sm:$0xf0]  ;;  %v1558_v58 = vld [vmem:[%s2176_s0 + $0xf4] sm:$0xf] }
  0x2b   :  { %1574 = vmatpush.bf16.msra.mxu3 %v1513_v24  ;;  %559 = vmatpush.bf16.msra.mxu1 %v1521_v25  ;;  %v1388_v24 = vld [vmem:[%s2176_s0 + $0xc8] sm:$0xf0]  ;;  %v1412_v59 = vld [vmem:[%s2176_s0 + $0xf8] sm:$0xf0] }
  0x2c   :  { %830 = vperm.xlu2 %1603, %v752_v34   ;;  %v1391_v28 = vor.u32 %v1552_v23, %v1388_v24  ;;  %v1567_v34 = vld [vmem:[#allocation6 + $0x38] sm:$0xff]  ;;  %v1415_v63 = vor.u32 %v1558_v58, %v1412_v59  ;;  %v1378_v58 = vld [vmem:[%s2176_s0 + $0xb0] sm:$0xf] }
  0x2d   :  { %1049 = vmatpush.bf16.msra.mxu2 %v1567_v34  ;;  %v1551_v59 = vld [vmem:[%s2176_s0 + $0xb4] sm:$0xf0] }
  0x2e   :  { %471 = vmatpush.bf16.msra.mxu0 %v1512_v26 }
  0x2f   :  { %1575 = vmatpush.bf16.msra.mxu3 %v1512_v26  ;;  %560 = vmatpush.bf16.msra.mxu1 %v1814_v27  ;;  %v1324_v26 = vld [vmem:[%s2176_s0 + $0x48] sm:$0xf0] }
  0x31   :  { %840 = vperm.xlu1 %1602, %v754_v35   ;;  %472 = vmatmul.bf16.vlgmr.msra.gmra.mxu0 %v1291_v37  ;;  %v1538_v35 = vld [vmem:[%s2176_s0 + $0x54] sm:$0xf]  ;;  %v1331_v37 = vor.u32 %v1539_v31, %v1330_v30 }
  0x32   :  { %835 = vperm.xlu0 %1601, %v753_v36   ;;  %532 = vmatmul.bf16.vlgmr.msra.gmra.mxu3 %v1387_v38  ;;  %v1332_v36 = vld [vmem:[%s2176_s0 + $0x58] sm:$0xf0]  ;;  %v1399_v38 = vor.u32 %v1554_v32, %v1396_v33 }
  0x33   :  { %1576 = vmatpush.bf16.msrb.mxu3 %v1769_v4  ;;  %561 = vmatmul.bf16.vlgmr.msra.gmra.mxu1 %v1295_v39  ;;  %v1403_v4 = vor.u32 %v1557_v61, %v1402_v60  ;;  %v1335_v39 = vor.u32 %v1538_v35, %v1332_v36  ;;  %v1542_v60 = vld [vmem:[%s2176_s0 + $0x74] sm:$0xf]  ;;  %v1348_v61 = vld [vmem:[%s2176_s0 + $0x78] sm:$0xf0] }
  0x34   :  { %845 = vperm.xlu2 %1603, %v755_v40   ;;  %v1566_v40 = vld [vmem:[#allocation6 + $0x30] sm:$0xff] }
  0x35   :  { %1050 = vmatpush.bf16.msra.mxu2 %v1566_v40 }
  0x37   :  { %1577 = vmatpush.bf16.msrb.mxu3 %v1772_v6  ;;  %v769_v6 = vld [vmem:[%s2178_s2 + $0xe0] sm:$0xff]  ;;  %s1272_s2 = sshll.u32 %s2182_s6, 4  ;;  %s1273_s2 = int_to_ptr.hbm [resolvable:$true] %s1272_s2 }
  0x39   :  { %855 = vperm.xlu1 %1602, %v757_v41   ;;  %v1565_v41 = vld [vmem:[#allocation6 + $0x28] sm:$0xff] }
  0x3a   :  { %850 = vperm.xlu0 %1601, %v756_v42   ;;  %1051 = vmatpush.bf16.msra.mxu2 %v1565_v41  ;;  %v1564_v42 = vld [vmem:[#allocation6 + $0x20] sm:$0xff] }
  0x3b   :  { %1578 = vmatpush.bf16.msrb.mxu3 %v1781_v10  ;;  %v1535_v10 = vld [vmem:[%s2176_s0 + $0x34] sm:$0xf0] }
  0x3c   :  { %860 = vperm.xlu2 %1603, %v758_v49   ;;  %v1339_v49 = vor.u32 %v1541_v44, %v1338_v43 }
  0x3e   :  { %1052 = vmatpush.bf16.msra.mxu2 %v1564_v42 }
  0x3f   :  { %1579 = vmatpush.bf16.msrb.mxu3 %v1787_v13  ;;  %v1534_v13 = vld [vmem:[%s2176_s0 + $0x34] sm:$0xf] }
  0x41   :  { %900 = vperm.xlu1 %1602, %v766_v50   ;;  %477 = vmatmul.bf16.gmra.mxu0 %v1299_v52  ;;  %v1407_v50 = vor.u32 %v1556_v45, %v1404_v46  ;;  %v1343_v52 = vor.u32 %v1540_v47, %v1340_v48 }
  0x42   :  { %895 = vperm.xlu0 %1601, %v765_v51   ;;  %537 = vmatmul.bf16.gmra.mxu3 %v1395_v53  ;;  %v1563_v51 = vld [vmem:[#allocation6 + $0x18] sm:$0xff]  ;;  %v1562_v53 = vld [vmem:[#allocation6 + $0x10] sm:$0xff] }
  0x43   :  { %1580 = vmatpush.bf16.msrb.mxu3 %v1799_v18  ;;  %566 = vmatmul.bf16.gmra.mxu1 %v1303_v54  ;;  %v1315_v18 = vor.u32 %v1535_v10, %v1314_v9  ;;  %v1561_v54 = vld [vmem:[#allocation6 + $0x8] sm:$0xff] }
  0x44   :  { %865 = vperm.xlu2 %1603, %v759_v55   ;;  %1053 = vmatpush.bf16.msra.mxu2 %v1563_v51  ;;  %v1346_v55 = vld [vmem:[%s2176_s0 + $0x70] sm:$0xf] }
  0x47   :  { %1581 = vmatpush.bf16.msrb.mxu3 %v1802_v20  ;;  %v1319_v20 = vor.u32 %v1534_v13, %v1316_v14 }
  0x48   :  { %1054 = vmatpush.bf16.msra.mxu2 %v1562_v53 }
  0x49   :  { %905 = vperm.xlu1 %1602, %v767_v56   ;;  %v1560_v56 = vld [vmem:[#allocation6] sm:$0xff] }
  0x4a   :  { %870 = vperm.xlu0 %1601, %v760_v57   ;;  %v1543_v57 = vld [vmem:[%s2176_s0 + $0x74] sm:$0xf0] }
  0x4b   :  { %1582 = vmatpush.bf16.msrb.mxu3 %v1521_v25  ;;  %v1536_v25 = vld [vmem:[%s2176_s0 + $0x44] sm:$0xf]  ;;  %v1347_v62 = vor.u32 %v1543_v57, %v1346_v55 }
  0x4c   :  { %910 = vperm.xlu2 %1603, %v768_v0   ;;  %v1327_v29 = vor.u32 %v1536_v25, %v1324_v26  ;;  %1055 = vmatpush.bf16.msra.mxu2 %v1561_v54  ;;  %v1351_v0 = vor.u32 %v1542_v60, %v1348_v61  ;;  %v1550_v61 = vld [vmem:[%s2176_s0 + $0xb4] sm:$0xf] }
  0x4f   :  { %1583 = vmatpush.bf16.msrb.mxu3 %v1814_v27  ;;  %v1323_v27 = vor.u32 %v1537_v22, %v1322_v21  ;;  %v1364_v21 = vld [vmem:[%s2176_s0 + $0x98] sm:$0xf0] }
  0x50   :  { %1056 = vmatpush.bf16.msra.mxu2 %v1560_v56 }
  0x51   :  { %880 = vperm.xlu1 %1602, %v762_v1   ;;  %482 = vmatmul.bf16.gmra.mxu0 %v1307_v3  ;;  %v1354_v1 = vld [vmem:[%s2176_s0 + $0x80] sm:$0xf]  ;;  %v1544_v3 = vld [vmem:[%s2176_s0 + $0x84] sm:$0xf] }
  0x52   :  { %875 = vperm.xlu0 %1601, %v761_v2   ;;  %542 = vmatmul.bf16.gmra.mxu3 %v1403_v4  ;;  %v1545_v2 = vld [vmem:[%s2176_s0 + $0x84] sm:$0xf0]  ;;  %v1356_v4 = vld [vmem:[%s2176_s0 + $0x88] sm:$0xf0] }
  0x53   :  { %571 = vmatmul.bf16.gmra.mxu1 %v1311_v5  ;;  %1584 = vmatpush.bf16.msra.mxu3 %v1567_v34  ;;  %v1355_v5 = vor.u32 %v1545_v2, %v1354_v1  ;;  %v1379_v1 = vor.u32 %v1551_v59, %v1378_v58 }
  0x54   :  { %915 = vperm.xlu2 %1603, %v769_v6  }
  0x57   :  { %1585 = vmatpush.bf16.msra.mxu3 %v1566_v40  ;;  %v1548_v40 = vld [vmem:[%s2176_s0 + $0xa4] sm:$0xf] }
  0x59   :  { %885 = vperm.xlu1 %1602, %v763_v7   ;;  %v1359_v7 = vor.u32 %v1544_v3, %v1356_v4 }
  0x5a   :  { %920 = vperm.xlu0 %1601, %v770_v8  }
  0x5b   :  { %1586 = vmatpush.bf16.msra.mxu3 %v1565_v41  ;;  %v1372_v41 = vld [vmem:[%s2176_s0 + $0xa8] sm:$0xf0] }
  0x5c   :  { %890 = vperm.xlu2 %1603, %v764_v15   ;;  %v1375_v46 = vor.u32 %v1548_v40, %v1372_v41 }
  0x5f   :  { %1587 = vmatpush.bf16.msra.mxu3 %v1564_v42 }
  0x61   :  { %930 = vperm.xlu1 %1602, %v772_v16   ;;  %487 = vmatmul.bf16.gmra.mxu0 %v1315_v18  ;;  %v1362_v18 = vld [vmem:[%s2176_s0 + $0x90] sm:$0xf] }
  0x62   :  { %925 = vperm.xlu0 %1601, %v771_v17   ;;  %547 = vmatmul.bf16.gmra.mxu3 %v1411_v19  ;;  %v1547_v19 = vld [vmem:[%s2176_s0 + $0x94] sm:$0xf0] }
  0x63   :  { %576 = vmatmul.bf16.gmra.mxu1 %v1319_v20  ;;  %1588 = vmatpush.bf16.msra.mxu3 %v1563_v51  ;;  %v1546_v20 = vld [vmem:[%s2176_s0 + $0x94] sm:$0xf]  ;;  %v1363_v24 = vor.u32 %v1547_v19, %v1362_v18 }
  0x64   :  { %v1367_v26 = vor.u32 %v1546_v20, %v1364_v21 }
  0x67   :  { %1589 = vmatpush.bf16.msra.mxu3 %v1562_v53 }
  0x6b   :  { %1590 = vmatpush.bf16.msra.mxu3 %v1561_v54 }
  0x6e   :  { %v796_v32 = vpop.permute.xlu2 %795 }
  0x6f   :  { %1591 = vmatpush.bf16.msra.mxu3 %v1560_v56 }
  0x71   :  { %492 = vmatmul.bf16.gmra.mxu0 %v1323_v27 }
  0x72   :  { %621 = vmatmul.bf16.vlgmr.msrb.gmra.mxu3 %v1391_v28 }
  0x73   :  { %581 = vmatmul.bf16.gmra.mxu1 %v1327_v29 }
  0x76   :  { %v801_v48 = vpop.permute.xlu2 %800 }
  0x7e   :  { %v816_v60 = vpop.permute.xlu2 %815 }
  0x81   :  { %497 = vmatmul.bf16.gmra.mxu0 %v1331_v37 }
  0x82   :  { %626 = vmatmul.bf16.gmra.mxu3 %v1399_v38  ;;  %v1370_v38 = vld [vmem:[%s2176_s0 + $0xa0] sm:$0xf] }
  0x83   :  { %586 = vmatmul.bf16.gmra.mxu1 %v1335_v39  ;;  %v786_v27 = vpop.permute.xlu1 %785  ;;  %v1549_v39 = vld [vmem:[%s2176_s0 + $0xa4] sm:$0xf0] }
  0x84   :  { %v776_v8 = vpop.permute.xlu0 %775  ;;  %v1371_v44 = vor.u32 %v1549_v39, %v1370_v38 }
  0x8b   :  { %v791_v35 = vpop.permute.xlu1 %790 }
  0x8c   :  { %v781_v15 = vpop.permute.xlu0 %780 }
  0x91   :  { %502 = vmatmul.bf16.gmra.mxu0 %v1339_v49 }
  0x92   :  { %631 = vmatmul.bf16.gmra.mxu3 %v1407_v50 }
  0x93   :  { %591 = vmatmul.bf16.gmra.mxu1 %v1343_v52  ;;  %v811_v50 = vpop.permute.xlu1 %810 }
  0x94   :  { %v806_v51 = vpop.permute.xlu0 %805 }
  0x9b   :  { %v826_v4 = vpop.permute.xlu1 %825 }
  0xa1   :  { %507 = vmatmul.bf16.gmra.mxu0 %v1347_v62  ;;  %v1380_v62 = vld [vmem:[%s2176_s0 + $0xb8] sm:$0xf0] }
  0xa2   :  { %636 = vmatmul.bf16.gmra.mxu3 %v1415_v63  ;;  %v1383_v3 = vor.u32 %v1550_v61, %v1380_v62 }
  0xa3   :  { %596 = vmatmul.bf16.gmra.mxu1 %v1351_v0 }
  0xae   :  { %v473_v6 = vpop.f32.mrf.mxu0 }
  0xb0   :  { %v562_v9 = vpop.f32.mrf.mxu1 }
  0xb1   :  { %512 = vmatmul.bf16.gmra.mxu0 %v1355_v5  ;;  %v563_v11 = vadd.f32 %v562_v9, %v473_v6  ;;  %v821_v6 = vpop.permute.xlu0 %820 }
  0xb3   :  { %601 = vmatmul.bf16.gmra.mxu1 %v1359_v7  ;;  %v933_v16 = vmul.f32 %v776_v8, %v563_v11  ;;  %v831_v8 = vpop.permute.xlu2 %830 }
  0xb5   :  { %v2043_v10 = vpop.f32.mrf.mxu3 }
  0xb6   :  { %v475_v12 = vpop.f32.mrf.mxu0 }
  0xb8   :  { %v564_v13 = vpop.f32.mrf.mxu1 }
  0xb9   :  { %v565_v14 = vadd.f32 %v564_v13, %v475_v12 }
  0xbb   :  { %v934_v17 = vmul.f32 %v781_v15, %v565_v14  ;;  %v2093_v14 = vpop.permute.xlu1 %840  ;;  %v836_v15 = vpop.permute.xlu0 %835 }
  0xbc   :  { %v2097_v21 = vpop.permute.xlu2 %845 }
  0xbd   :  { %v2057_v22 = vpop.f32.mrf.mxu3  ;;  %v965_v23 = vpack.c.bf16 %v934_v17, %v933_v16 }
  0xbe   :  { %v478_v25 = vpop.f32.mrf.mxu0 }
  0xbf   :  { %1057 = vmatmul.bf16.vlgmr.msra.gmra.mxu2 %v965_v23 }
  0xc0   :  { %v567_v28 = vpop.f32.mrf.mxu1 }
  0xc1   :  { %517 = vmatmul.bf16.gmra.mxu0 %v1363_v24  ;;  %v568_v30 = vadd.f32 %v567_v28, %v478_v25 }
  0xc3   :  { %606 = vmatmul.bf16.gmra.mxu1 %v1367_v26  ;;  %v935_v36 = vmul.f32 %v786_v27, %v568_v30  ;;  %v2099_v24 = vpop.permute.xlu1 %855  ;;  %v2101_v25 = vpop.permute.xlu0 %850 }
  0xc5   :  { %v2059_v29 = vpop.f32.mrf.mxu3 }
  0xc6   :  { %v480_v31 = vpop.f32.mrf.mxu0 }
  0xc8   :  { %v569_v33 = vpop.f32.mrf.mxu1 }
  0xc9   :  { %v570_v34 = vadd.f32 %v569_v33, %v480_v31 }
  0xcb   :  { %v936_v37 = vmul.f32 %v791_v35, %v570_v34  ;;  %v901_v38 = vpop.permute.xlu1 %900  ;;  %v896_v40 = vpop.permute.xlu0 %895 }
  0xcd   :  { %v2073_v42 = vpop.f32.mrf.mxu3  ;;  %v966_v43 = vpack.c.bf16 %v936_v37, %v935_v36 }
  0xce   :  { %v483_v45 = vpop.f32.mrf.mxu0 }
  0xcf   :  { %1062 = vmatmul.bf16.gmra.mxu2 %v966_v43 }
  0xd0   :  { %v572_v47 = vpop.f32.mrf.mxu1 }
  0xd1   :  { %522 = vmatmul.bf16.gmra.mxu0 %v1371_v44  ;;  %v573_v52 = vadd.f32 %v572_v47, %v483_v45 }
  0xd3   :  { %611 = vmatmul.bf16.gmra.mxu1 %v1375_v46  ;;  %v937_v56 = vmul.f32 %v796_v32, %v573_v52  ;;  %v2103_v32 = vpop.permute.xlu2 %860 }
  0xd5   :  { %v2075_v49 = vpop.f32.mrf.mxu3 }
  0xd6   :  { %v485_v53 = vpop.f32.mrf.mxu0 }
  0xd8   :  { %v574_v54 = vpop.f32.mrf.mxu1 }
  0xd9   :  { %v575_v55 = vadd.f32 %v574_v54, %v485_v53  ;;  %v2109_v53 = vpop.permute.xlu0 %870 }
  0xdb   :  { %v938_v57 = vmul.f32 %v801_v48, %v575_v55  ;;  %v2107_v47 = vpop.permute.xlu2 %865 }
  0xdd   :  { %v2089_v63 = vpop.f32.mrf.mxu3  ;;  %v967_v0 = vpack.c.bf16 %v938_v57, %v937_v56 }
  0xde   :  { %v488_v2 = vpop.f32.mrf.mxu0 }
  0xdf   :  { %1067 = vmatmul.bf16.gmra.mxu2 %v967_v0 }
  0xe0   :  { %v577_v5 = vpop.f32.mrf.mxu1 }
  0xe1   :  { %527 = vmatmul.bf16.gmra.mxu0 %v1379_v1  ;;  %v578_v9 = vadd.f32 %v577_v5, %v488_v2 }
  0xe3   :  { %616 = vmatmul.bf16.gmra.mxu1 %v1383_v3  ;;  %v939_v16 = vmul.f32 %v806_v51, %v578_v9  ;;  %v911_v58 = vpop.permute.xlu2 %910  ;;  %v2113_v3 = vpop.permute.xlu0 %875 }
  0xe5   :  { %v2091_v7 = vpop.f32.mrf.mxu3 }
  0xe6   :  { %v490_v11 = vpop.f32.mrf.mxu0 }
  0xe8   :  { %v579_v12 = vpop.f32.mrf.mxu1 }
  0xe9   :  { %v580_v13 = vadd.f32 %v579_v12, %v490_v11 }
  0xeb   :  { %v940_v17 = vmul.f32 %v811_v50, %v580_v13 }
  0xed   :  { %v2095_v18 = vpop.f32.mrf.mxu3  ;;  %v968_v19 = vpack.c.bf16 %v940_v17, %v939_v16  ;;  %v916_v17 = vpop.permute.xlu2 %915 }
  0xee   :  { %v493_v20 = vpop.f32.mrf.mxu0 }
  0xef   :  { %1072 = vmatmul.bf16.gmra.mxu2 %v968_v19 }
  0xf0   :  { %v582_v23 = vpop.f32.mrf.mxu1 }
  0xf1   :  { %v583_v27 = vadd.f32 %v582_v23, %v493_v20  ;;  %v921_v20 = vpop.permute.xlu0 %920 }
  0xf3   :  { %v941_v33 = vmul.f32 %v816_v60, %v583_v27  ;;  %v906_v60 = vpop.permute.xlu1 %905 }
  0xf5   :  { %v622_v26 = vpop.f32.mrf.mxu3 }
  0xf6   :  { %v495_v28 = vpop.f32.mrf.mxu0  ;;  %v623_v35 = vadd.f32 %v622_v26, %v2043_v10 }
  0xf8   :  { %v584_v30 = vpop.f32.mrf.mxu1  ;;  %v957_v43 = vmul.f32 %v896_v40, %v623_v35 }
  0xf9   :  { %v585_v31 = vadd.f32 %v584_v30, %v495_v28 }
  0xfb   :  { %v942_v34 = vmul.f32 %v821_v6, %v585_v31  ;;  %v2115_v9 = vpop.permute.xlu1 %880 }
  0xfd   :  { %v624_v36 = vpop.f32.mrf.mxu3  ;;  %v969_v37 = vpack.c.bf16 %v942_v34, %v941_v33 }
  0xfe   :  { %v625_v39 = vadd.f32 %v624_v36, %v2057_v22  ;;  %v498_v41 = vpop.f32.mrf.mxu0 }
  0xff   :  { %1077 = vmatmul.bf16.gmra.mxu2 %v969_v37 }
 0x100   :  { %v958_v44 = vmul.f32 %v901_v38, %v625_v39  ;;  %v587_v45 = vpop.f32.mrf.mxu1 }
 0x101   :  { %v588_v50 = vadd.f32 %v587_v45, %v498_v41  ;;  %v926_v41 = vpop.permute.xlu0 %925 }
 0x102   :  { %v977_v46 = vpack.c.bf16 %v958_v44, %v957_v43 }
 0x103   :  { %v943_v54 = vmul.f32 %v826_v4, %v588_v50  ;;  %v2120_v31 = vpop.permute.xlu1 %885 }
 0x104   :  { %1117 = vmatmul.bf16.vlgmr.msra.gmra.mxu3 %v977_v46 }
 0x105   :  { %v627_v48 = vpop.f32.mrf.mxu3 }
 0x106   :  { %v500_v51 = vpop.f32.mrf.mxu0  ;;  %v628_v22 = vadd.f32 %v627_v48, %v2059_v29 }
 0x108   :  { %v589_v52 = vpop.f32.mrf.mxu1  ;;  %v959_v62 = vmul.f32 %v906_v60, %v628_v22 }
 0x109   :  { %v590_v10 = vadd.f32 %v589_v52, %v500_v51 }
 0x10b   :  { %v944_v55 = vmul.f32 %v831_v8, %v590_v10  ;;  %v931_v39 = vpop.permute.xlu1 %930 }
 0x10d   :  { %v629_v56 = vpop.f32.mrf.mxu3  ;;  %v970_v57 = vpack.c.bf16 %v944_v55, %v943_v54 }
 0x10e   :  { %v630_v59 = vadd.f32 %v629_v56, %v2073_v42  ;;  %v503_v61 = vpop.f32.mrf.mxu0 }
 0x10f   :  { %1082 = vmatmul.bf16.gmra.mxu2 %v970_v57  ;;  %v1170_v57 = vld [vmem:[#allocation8] sm:$0xff] }
 0x110   :  { %v960_v0 = vmul.f32 %v911_v58, %v630_v59  ;;  %v592_v1 = vpop.f32.mrf.mxu1 }
 0x111   :  { %v593_v4 = vadd.f32 %v592_v1, %v503_v61 }
 0x112   :  { %v978_v2 = vpack.c.bf16 %v960_v0, %v959_v62 }
 0x113   :  { %v945_v11 = vmul.f32 %v836_v15, %v593_v4 }
 0x114   :  { %1122 = vmatmul.bf16.gmra.mxu3 %v978_v2 }
 0x115   :  { %v632_v5 = vpop.f32.mrf.mxu3 }
 0x116   :  { %v505_v6 = vpop.f32.mrf.mxu0  ;;  %v633_v12 = vadd.f32 %v632_v5, %v2075_v49  ;;  %v1171_v5 = vld [vmem:[#allocation8 + $0x8] sm:$0xff] }
 0x118   :  { %v594_v8 = vpop.f32.mrf.mxu1  ;;  %v961_v26 = vmul.f32 %v916_v17, %v633_v12 }
 0x119   :  { %v595_v29 = vadd.f32 %v594_v8, %v505_v6 }
 0x11b   :  { %v946_v42 = vmul.f32 %v2093_v14, %v595_v29 }
 0x11d   :  { %v634_v13 = vpop.f32.mrf.mxu3  ;;  %v971_v16 = vpack.c.bf16 %v946_v42, %v945_v11 }
 0x11e   :  { %v635_v19 = vadd.f32 %v634_v13, %v2089_v63  ;;  %v508_v23 = vpop.f32.mrf.mxu0  ;;  %v1172_v13 = vld [vmem:[#allocation8 + $0x10] sm:$0xff] }
 0x11f   :  { %1087 = vmatmul.bf16.gmra.mxu2 %v971_v16 }
 0x120   :  { %v962_v27 = vmul.f32 %v921_v20, %v635_v19  ;;  %v597_v28 = vpop.f32.mrf.mxu1 }
 0x121   :  { %v598_v33 = vadd.f32 %v597_v28, %v508_v23 }
 0x122   :  { %v979_v30 = vpack.c.bf16 %v962_v27, %v961_v26 }
 0x123   :  { %v947_v35 = vmul.f32 %v2097_v21, %v598_v33 }
 0x124   :  { %1127 = vmatmul.bf16.gmra.mxu3 %v979_v30  ;;  %v1173_v30 = vld [vmem:[#allocation8 + $0x18] sm:$0xff] }
 0x125   :  { %v637_v15 = vpop.f32.mrf.mxu3 }
 0x126   :  { %v510_v14 = vpop.f32.mrf.mxu0  ;;  %v638_v63 = vadd.f32 %v637_v15, %v2091_v7 }
 0x128   :  { %v599_v34 = vpop.f32.mrf.mxu1  ;;  %v963_v44 = vmul.f32 %v926_v41, %v638_v63  ;;  %v1174_v63 = vld [vmem:[#allocation8 + $0x20] sm:$0xff]  ;;  %v891_v41 = vpop.permute.xlu2 %890 }
 0x129   :  { %v600_v49 = vadd.f32 %v599_v34, %v510_v14 }
 0x12b   :  { %v948_v36 = vmul.f32 %v2101_v25, %v600_v49 }
 0x12d   :  { %v639_v37 = vpop.f32.mrf.mxu3  ;;  %v972_v38 = vpack.c.bf16 %v948_v36, %v947_v35 }
 0x12e   :  { %v640_v40 = vadd.f32 %v639_v37, %v2095_v18  ;;  %v513_v43 = vpop.f32.mrf.mxu0  ;;  %v2131_v18 = vld [vmem:[%s2180_s4] ss:$0 sm:$0xff]  ;;  %s1715_s4 = smov [#allocation9]  }
 0x12f   :  { %1092 = vmatmul.bf16.gmra.mxu2 %v972_v38  ;;  %s1270_s28 = sshll.u32 %s1715_s4, 4  ;;  %s1271_s28 = int_to_ptr.vmem [resolvable:$true] %s1270_s28 }
 0x130   :  { %v964_v45 = vmul.f32 %v931_v39, %v640_v40  ;;  %v602_v46 = vpop.f32.mrf.mxu1 }
 0x131   :  { %v603_v50 = vadd.f32 %v602_v46, %v513_v43 }
 0x132   :  { %v980_v48 = vpack.c.bf16 %v964_v45, %v963_v44 }
 0x133   :  { %v949_v25 = vmul.f32 %v2099_v24, %v603_v50 }
 0x134   :  { %1132 = vmatmul.bf16.gmra.mxu3 %v980_v48  ;;  %v1175_v48 = vld [vmem:[#allocation8 + $0x28] sm:$0xff] }
 0x136   :  { %v515_v51 = vpop.f32.mrf.mxu0 }
 0x138   :  { %v604_v21 = vpop.f32.mrf.mxu1 }
 0x139   :  { %v605_v52 = vadd.f32 %v604_v21, %v515_v51 }
 0x13b   :  { %v950_v7 = vmul.f32 %v2103_v32, %v605_v52 }
 0x13d   :  { %v973_v10 = vpack.c.bf16 %v950_v7, %v949_v25  ;;  %v1176_v7 = vld [vmem:[#allocation8 + $0x30] sm:$0xff] }
 0x13e   :  { %v518_v54 = vpop.f32.mrf.mxu0 }
 0x13f   :  { %1097 = vmatmul.bf16.gmra.mxu2 %v973_v10 }
 0x140   :  { %v607_v55 = vpop.f32.mrf.mxu1 }
 0x141   :  { %v608_v59 = vadd.f32 %v607_v55, %v518_v54 }
 0x142   :  { %v1058_v22 = vpop.f32.mrf.mxu2 }
 0x143   :  { %v1059_v56 = vadd.f32 %v2131_v18, %v1058_v22  ;;  %v951_v0 = vmul.f32 %v2107_v47, %v608_v59 }
 0x145   :  { %v1138_v58 = vmax.f32 %v1059_v56, 0.0 }
 0x146   :  { %v520_v61 = vpop.f32.mrf.mxu0 }
 0x147   :  { %v1202_v60 = vmul.f32 %v1170_v57, %v1138_v58 }
 0x148   :  { %v609_v24 = vpop.f32.mrf.mxu1 }
 0x149   :  { %1234 = vst [vmem:[#allocation9] sm:$0xff] %v1202_v60  ;;  %v610_v32 = vadd.f32 %v609_v24, %v520_v61  ;;  %v1178_v60 = vld [vmem:[#allocation8 + $0x40] sm:$0xff] }
 0x14a   :  { %v1060_v62 = vpop.f32.mrf.mxu2 }
 0x14b   :  { %v952_v1 = vmul.f32 %v2109_v53, %v610_v32  ;;  %v1061_v2 = vadd.f32 %v2131_v18, %v1060_v62 }
 0x14d   :  { %v1139_v4 = vmax.f32 %v1061_v2, 0.0  ;;  %v974_v6 = vpack.c.bf16 %v952_v1, %v951_v0  ;;  %v1194_v0 = vld [vmem:[#allocation8 + $0xc0] sm:$0xff] }
 0x14e   :  { %v523_v29 = vpop.f32.mrf.mxu0 }
 0x14f   :  { %v1203_v8 = vmul.f32 %v1171_v5, %v1139_v4  ;;  %1102 = vmatmul.bf16.gmra.mxu2 %v974_v6  ;;  %v1179_v6 = vld [vmem:[#allocation8 + $0x48] sm:$0xff] }
 0x150   :  { %v612_v11 = vpop.f32.mrf.mxu1 }
 0x151   :  { %1235 = vst [vmem:[#allocation9 + $0x8] sm:$0xff] %v1203_v8  ;;  %v613_v17 = vadd.f32 %v612_v11, %v523_v29 }
 0x152   :  { %v1063_v42 = vpop.f32.mrf.mxu2 }
 0x153   :  { %v1064_v12 = vadd.f32 %v2131_v18, %v1063_v42  ;;  %v953_v26 = vmul.f32 %v2113_v3, %v613_v17 }
 0x155   :  { %v1140_v16 = vmax.f32 %v1064_v12, 0.0  ;;  %v1195_v12 = vld [vmem:[#allocation8 + $0xc8] sm:$0xff] }
 0x156   :  { %v525_v47 = vpop.f32.mrf.mxu0 }
 0x157   :  { %v1204_v19 = vmul.f32 %v1172_v13, %v1140_v16 }
 0x158   :  { %v614_v20 = vpop.f32.mrf.mxu1 }
 0x159   :  { %1236 = vst [vmem:[#allocation9 + $0x10] sm:$0xff] %v1204_v19  ;;  %v615_v53 = vadd.f32 %v614_v20, %v525_v47  ;;  %v1180_v47 = vld [vmem:[#allocation8 + $0x50] sm:$0xff] }
 0x15a   :  { %v1065_v23 = vpop.f32.mrf.mxu2 }
 0x15b   :  { %v954_v27 = vmul.f32 %v2115_v9, %v615_v53  ;;  %v1066_v28 = vadd.f32 %v2131_v18, %v1065_v23 }
 0x15d   :  { %v1141_v15 = vmax.f32 %v1066_v28, 0.0  ;;  %v975_v33 = vpack.c.bf16 %v954_v27, %v953_v26  ;;  %v1196_v27 = vld [vmem:[#allocation8 + $0xd0] sm:$0xff] }
 0x15e   :  { %v528_v34 = vpop.f32.mrf.mxu0 }
 0x15f   :  { %v1205_v14 = vmul.f32 %v1173_v30, %v1141_v15  ;;  %1107 = vmatmul.bf16.gmra.mxu2 %v975_v33 }
 0x160   :  { %v617_v49 = vpop.f32.mrf.mxu1 }
 0x161   :  { %1237 = vst [vmem:[#allocation9 + $0x18] sm:$0xff] %v1205_v14  ;;  %v618_v38 = vadd.f32 %v617_v49, %v528_v34  ;;  %v1181_v14 = vld [vmem:[#allocation8 + $0x58] sm:$0xff] }
 0x162   :  { %v1068_v35 = vpop.f32.mrf.mxu2 }
 0x163   :  { %v1069_v36 = vadd.f32 %v2131_v18, %v1068_v35  ;;  %v955_v44 = vmul.f32 %v2120_v31, %v618_v38  ;;  %v1177_v31 = vld [vmem:[#allocation8 + $0x38] sm:$0xff] }
 0x165   :  { %v1142_v37 = vmax.f32 %v1069_v36, 0.0 }
 0x166   :  { %v530_v3 = vpop.f32.mrf.mxu0 }
 0x167   :  { %v1206_v39 = vmul.f32 %v1174_v63, %v1142_v37  ;;  %v1197_v63 = vld [vmem:[#allocation8 + $0xd8] sm:$0xff] }
 0x168   :  { %v619_v40 = vpop.f32.mrf.mxu1 }
 0x169   :  { %1238 = vst [vmem:[#allocation9 + $0x20] sm:$0xff] %v1206_v39  ;;  %v620_v9 = vadd.f32 %v619_v40, %v530_v3  ;;  %v1182_v40 = vld [vmem:[#allocation8 + $0x60] sm:$0xff] }
 0x16a   :  { %v1070_v43 = vpop.f32.mrf.mxu2 }
 0x16b   :  { %v956_v45 = vmul.f32 %v891_v41, %v620_v9  ;;  %v1071_v46 = vadd.f32 %v2131_v18, %v1070_v43 }
 0x16d   :  { %v1143_v50 = vmax.f32 %v1071_v46, 0.0  ;;  %v976_v51 = vpack.c.bf16 %v956_v45, %v955_v44  ;;  %v1198_v45 = vld [vmem:[#allocation8 + $0xe0] sm:$0xff] }
 0x16f   :  { %v1207_v21 = vmul.f32 %v1175_v48, %v1143_v50  ;;  %1112 = vmatmul.bf16.gmra.mxu2 %v976_v51 }
 0x171   :  { %1239 = vst [vmem:[#allocation9 + $0x28] sm:$0xff] %v1207_v21  ;;  %v1183_v21 = vld [vmem:[#allocation8 + $0x68] sm:$0xff] }
 0x172   :  { %v1073_v52 = vpop.f32.mrf.mxu2 }
 0x173   :  { %v1074_v25 = vadd.f32 %v2131_v18, %v1073_v52 }
 0x175   :  { %v1144_v10 = vmax.f32 %v1074_v25, 0.0 }
 0x177   :  { %v1208_v54 = vmul.f32 %v1176_v7, %v1144_v10 }
 0x179   :  { %1240 = vst [vmem:[#allocation9 + $0x30] sm:$0xff] %v1208_v54  ;;  %v1199_v54 = vld [vmem:[#allocation8 + $0xe8] sm:$0xff] }
 0x17a   :  { %v1075_v55 = vpop.f32.mrf.mxu2 }
 0x17b   :  { %v1076_v22 = vadd.f32 %v2131_v18, %v1075_v55 }
 0x17d   :  { %v1145_v56 = vmax.f32 %v1076_v22, 0.0 }
 0x17f   :  { %v1209_v57 = vmul.f32 %v1177_v31, %v1145_v56 }
 0x181   :  { %1241 = vst [vmem:[#allocation9 + $0x38] sm:$0xff] %v1209_v57  ;;  %v1184_v57 = vld [vmem:[#allocation8 + $0x70] sm:$0xff] }
 0x182   :  { %v1078_v58 = vpop.f32.mrf.mxu2 }
 0x183   :  { %v1079_v59 = vadd.f32 %v2131_v18, %v1078_v58 }
 0x185   :  { %v1146_v61 = vmax.f32 %v1079_v59, 0.0 }
 0x187   :  { %v1210_v24 = vmul.f32 %v1178_v60, %v1146_v61  ;;  %v1118_v32 = vpop.f32.mrf.mxu3 }
 0x188   :  { %v1119_v62 = vadd.f32 %v2131_v18, %v1118_v32 }
 0x189   :  { %1242 = vst [vmem:[#allocation9 + $0x40] sm:$0xff] %v1210_v24  ;;  %v1200_v24 = vld [vmem:[#allocation8 + $0xf0] sm:$0xff] }
 0x18a   :  { %v1162_v1 = vmax.f32 %v1119_v62, 0.0  ;;  %v1080_v2 = vpop.f32.mrf.mxu2 }
 0x18b   :  { %v1081_v5 = vadd.f32 %v2131_v18, %v1080_v2  ;;  %v1185_v2 = vld [vmem:[#allocation8 + $0x78] sm:$0xff] }
 0x18c   :  { %v1226_v4 = vmul.f32 %v1194_v0, %v1162_v1 }
 0x18d   :  { %v1147_v8 = vmax.f32 %v1081_v5, 0.0 }
 0x18e   :  { %1258 = vst [vmem:[#allocation9 + $0xc0] sm:$0xff] %v1226_v4 }
 0x18f   :  { %v1211_v29 = vmul.f32 %v1179_v6, %v1147_v8  ;;  %v1120_v11 = vpop.f32.mrf.mxu3 }
 0x190   :  { %v1121_v42 = vadd.f32 %v2131_v18, %v1120_v11 }
 0x191   :  { %1243 = vst [vmem:[#allocation9 + $0x48] sm:$0xff] %v1211_v29  ;;  %v1201_v29 = vld [vmem:[#allocation8 + $0xf8] sm:$0xff] }
 0x192   :  { %v1163_v13 = vmax.f32 %v1121_v42, 0.0  ;;  %v1083_v16 = vpop.f32.mrf.mxu2 }
 0x193   :  { %v1084_v17 = vadd.f32 %v2131_v18, %v1083_v16  ;;  %v1186_v16 = vld [vmem:[#allocation8 + $0x80] sm:$0xff] }
 0x194   :  { %v1227_v19 = vmul.f32 %v1195_v12, %v1163_v13 }
 0x195   :  { %v1148_v20 = vmax.f32 %v1084_v17, 0.0 }
 0x196   :  { %1259 = vst [vmem:[#allocation9 + $0xc8] sm:$0xff] %v1227_v19 }
 0x197   :  { %v1212_v53 = vmul.f32 %v1180_v47, %v1148_v20  ;;  %v1123_v23 = vpop.f32.mrf.mxu3 }
 0x198   :  { %v1124_v26 = vadd.f32 %v2131_v18, %v1123_v23 }
 0x199   :  { %1244 = vst [vmem:[#allocation9 + $0x50] sm:$0xff] %v1212_v53  ;;  %v1187_v53 = vld [vmem:[#allocation8 + $0x88] sm:$0xff] }
 0x19a   :  { %v1164_v28 = vmax.f32 %v1124_v26, 0.0  ;;  %v1085_v30 = vpop.f32.mrf.mxu2 }
 0x19b   :  { %v1086_v15 = vadd.f32 %v2131_v18, %v1085_v30  ;;  %v1188_v30 = vld [vmem:[#allocation8 + $0x90] sm:$0xff] }
 0x19c   :  { %v1228_v33 = vmul.f32 %v1196_v27, %v1164_v28 }
 0x19d   :  { %v1149_v34 = vmax.f32 %v1086_v15, 0.0 }
 0x19e   :  { %1260 = vst [vmem:[#allocation9 + $0xd0] sm:$0xff] %v1228_v33 }
 0x19f   :  { %v1213_v49 = vmul.f32 %v1181_v14, %v1149_v34  ;;  %v1125_v35 = vpop.f32.mrf.mxu3 }
 0x1a0   :  { %v1126_v36 = vadd.f32 %v2131_v18, %v1125_v35 }
 0x1a1   :  { %1245 = vst [vmem:[#allocation9 + $0x58] sm:$0xff] %v1213_v49  ;;  %v1189_v49 = vld [vmem:[#allocation8 + $0x98] sm:$0xff] }
 0x1a2   :  { %v1165_v37 = vmax.f32 %v1126_v36, 0.0  ;;  %v1088_v38 = vpop.f32.mrf.mxu2 }
 0x1a3   :  { %v1089_v39 = vadd.f32 %v2131_v18, %v1088_v38  ;;  %v1190_v38 = vld [vmem:[#allocation8 + $0xa0] sm:$0xff] }
 0x1a4   :  { %v1229_v3 = vmul.f32 %v1197_v63, %v1165_v37 }
 0x1a5   :  { %v1150_v9 = vmax.f32 %v1089_v39, 0.0 }
 0x1a6   :  { %1261 = vst [vmem:[#allocation9 + $0xd8] sm:$0xff] %v1229_v3 }
 0x1a7   :  { %v1214_v41 = vmul.f32 %v1182_v40, %v1150_v9  ;;  %v1128_v43 = vpop.f32.mrf.mxu3 }
 0x1a8   :  { %v1129_v44 = vadd.f32 %v2131_v18, %v1128_v43 }
 0x1a9   :  { %1246 = vst [vmem:[#allocation9 + $0x60] sm:$0xff] %v1214_v41  ;;  %v1191_v41 = vld [vmem:[#allocation8 + $0xa8] sm:$0xff] }
 0x1aa   :  { %v1166_v46 = vmax.f32 %v1129_v44, 0.0  ;;  %v1090_v48 = vpop.f32.mrf.mxu2 }
 0x1ab   :  { %v1091_v50 = vadd.f32 %v2131_v18, %v1090_v48  ;;  %v1192_v48 = vld [vmem:[#allocation8 + $0xb0] sm:$0xff] }
 0x1ac   :  { %v1230_v51 = vmul.f32 %v1198_v45, %v1166_v46 }
 0x1ad   :  { %v1151_v52 = vmax.f32 %v1091_v50, 0.0 }
 0x1ae   :  { %1262 = vst [vmem:[#allocation9 + $0xe0] sm:$0xff] %v1230_v51 }
 0x1af   :  { %v1215_v25 = vmul.f32 %v1183_v21, %v1151_v52  ;;  %v1130_v7 = vpop.f32.mrf.mxu3 }
 0x1b0   :  { %v1131_v10 = vadd.f32 %v2131_v18, %v1130_v7 }
 0x1b1   :  { %1247 = vst [vmem:[#allocation9 + $0x68] sm:$0xff] %v1215_v25  ;;  %v1193_v25 = vld [vmem:[#allocation8 + $0xb8] sm:$0xff] }
 0x1b2   :  { %v1167_v55 = vmax.f32 %v1131_v10, 0.0  ;;  %v1093_v22 = vpop.f32.mrf.mxu2 }
 0x1b3   :  { %v1094_v31 = vadd.f32 %v2131_v18, %v1093_v22 }
 0x1b4   :  { %v1231_v56 = vmul.f32 %v1199_v54, %v1167_v55 }
 0x1b5   :  { %v1152_v58 = vmax.f32 %v1094_v31, 0.0 }
 0x1b6   :  { %1263 = vst [vmem:[#allocation9 + $0xe8] sm:$0xff] %v1231_v56 }
 0x1b7   :  { %v1216_v59 = vmul.f32 %v1184_v57, %v1152_v58  ;;  %v1133_v60 = vpop.f32.mrf.mxu3 }
 0x1b8   :  { %v1134_v61 = vadd.f32 %v2131_v18, %v1133_v60 }
 0x1b9   :  { %1248 = vst [vmem:[#allocation9 + $0x70] sm:$0xff] %v1216_v59 }
 0x1ba   :  { %v1168_v32 = vmax.f32 %v1134_v61, 0.0  ;;  %v1095_v62 = vpop.f32.mrf.mxu2 }
 0x1bb   :  { %v1096_v0 = vadd.f32 %v2131_v18, %v1095_v62 }
 0x1bc   :  { %v1232_v1 = vmul.f32 %v1200_v24, %v1168_v32 }
 0x1bd   :  { %v1153_v5 = vmax.f32 %v1096_v0, 0.0 }
 0x1be   :  { %1264 = vst [vmem:[#allocation9 + $0xf0] sm:$0xff] %v1232_v1 }
 0x1bf   :  { %v1217_v4 = vmul.f32 %v1185_v2, %v1153_v5  ;;  %v1135_v6 = vpop.f32.mrf.mxu3 }
 0x1c0   :  { %v1136_v8 = vadd.f32 %v2131_v18, %v1135_v6 }
 0x1c1   :  { %1249 = vst [vmem:[#allocation9 + $0x78] sm:$0xff] %v1217_v4 }
 0x1c2   :  { %v1169_v11 = vmax.f32 %v1136_v8, 0.0  ;;  %v1098_v42 = vpop.f32.mrf.mxu2 }
 0x1c3   :  { %v1099_v12 = vadd.f32 %v2131_v18, %v1098_v42 }
 0x1c4   :  { %v1233_v13 = vmul.f32 %v1201_v29, %v1169_v11 }
 0x1c5   :  { %v1154_v17 = vmax.f32 %v1099_v12, 0.0 }
 0x1c6   :  { %1265 = vst [vmem:[#allocation9 + $0xf8] sm:$0xff] %v1233_v13 }
 0x1c7   :  { %v1218_v19 = vmul.f32 %v1186_v16, %v1154_v17 }
 0x1c9   :  { %1250 = vst [vmem:[#allocation9 + $0x80] sm:$0xff] %v1218_v19 }
 0x1ca   :  { %v1100_v47 = vpop.f32.mrf.mxu2 }
 0x1cb   :  { %v1101_v20 = vadd.f32 %v2131_v18, %v1100_v47 }
 0x1cd   :  { %v1155_v23 = vmax.f32 %v1101_v20, 0.0 }
 0x1cf   :  { %v1219_v26 = vmul.f32 %v1187_v53, %v1155_v23 }
 0x1d1   :  { %1251 = vst [vmem:[#allocation9 + $0x88] sm:$0xff] %v1219_v26 }
 0x1d2   :  { %v1103_v27 = vpop.f32.mrf.mxu2 }
 0x1d3   :  { %v1104_v28 = vadd.f32 %v2131_v18, %v1103_v27 }
 0x1d5   :  { %v1156_v15 = vmax.f32 %v1104_v28, 0.0 }
 0x1d7   :  { %v1220_v33 = vmul.f32 %v1188_v30, %v1156_v15 }
 0x1d9   :  { %1252 = vst [vmem:[#allocation9 + $0x90] sm:$0xff] %v1220_v33 }
 0x1da   :  { %v1105_v14 = vpop.f32.mrf.mxu2 }
 0x1db   :  { %v1106_v34 = vadd.f32 %v2131_v18, %v1105_v14 }
 0x1dd   :  { %v1157_v35 = vmax.f32 %v1106_v34, 0.0 }
 0x1df   :  { %v1221_v36 = vmul.f32 %v1189_v49, %v1157_v35 }
 0x1e1   :  { %1253 = vst [vmem:[#allocation9 + $0x98] sm:$0xff] %v1221_v36 }
 0x1e2   :  { %v1108_v63 = vpop.f32.mrf.mxu2 }
 0x1e3   :  { %v1109_v37 = vadd.f32 %v2131_v18, %v1108_v63 }
 0x1e5   :  { %v1158_v39 = vmax.f32 %v1109_v37, 0.0 }
 0x1e7   :  { %v1222_v3 = vmul.f32 %v1190_v38, %v1158_v39 }
 0x1e9   :  { %1254 = vst [vmem:[#allocation9 + $0xa0] sm:$0xff] %v1222_v3 }
 0x1ea   :  { %v1110_v40 = vpop.f32.mrf.mxu2 }
 0x1eb   :  { %v1111_v9 = vadd.f32 %v2131_v18, %v1110_v40 }
 0x1ed   :  { %v1159_v43 = vmax.f32 %v1111_v9, 0.0 }
 0x1ef   :  { %v1223_v44 = vmul.f32 %v1191_v41, %v1159_v43 }
 0x1f1   :  { %1255 = vst [vmem:[#allocation9 + $0xa8] sm:$0xff] %v1223_v44 }
 0x1f2   :  { %v1113_v45 = vpop.f32.mrf.mxu2 }
 0x1f3   :  { %v1114_v46 = vadd.f32 %v2131_v18, %v1113_v45 }
 0x1f5   :  { %v1160_v50 = vmax.f32 %v1114_v46, 0.0 }
 0x1f7   :  { %v1224_v51 = vmul.f32 %v1192_v48, %v1160_v50 }
 0x1f9   :  { %1256 = vst [vmem:[#allocation9 + $0xb0] sm:$0xff] %v1224_v51 }
 0x1fa   :  { %v1115_v21 = vpop.f32.mrf.mxu2 }
 0x1fb   :  { %v1116_v52 = vadd.f32 %v2131_v18, %v1115_v21 }
 0x1fd   :  { %v1161_v7 = vmax.f32 %v1116_v52, 0.0 }
 0x1ff   :  { %v1225_v10 = vmul.f32 %v1193_v25, %v1161_v7 }
 0x201   :  { %1257 = vst [vmem:[#allocation9 + $0xb8] sm:$0xff] %v1225_v10 }
 0x202   :  { %1278 = dma.vmem_to_hbm [thread:$0]  %s1271_s28, 4096, %s1273_s2, [#allocation5], %s1712_s13, %s1712_s13, %s1713_s14  }
 0x203   :  { %1705 = dma.done.wait [#allocation5], 4096  }
 0x204   :  { %1706 = vsyncadd [#allocation5], 4294963200 }
 0x205   :  { %1283 = vsyncpa [#allocation4], 1 }
 0x206   :  { %1284 = vsyncpa [#allocation7], 1 }
 0x207   :  { %1285 = vsyncpa [#allocation5], 1 }

</bundles_post_ra>
